<compile_context>
chip_gen: v5e
topology: v5e:2x2
jax: 0.10.0
libtpu: 0.0.40
codegen_flags: <defaults>
</compile_context>

<pallas_src>
import functools

import jax
import jax.numpy as jnp
from jax.experimental import pallas as pl
from jax.experimental.pallas import tpu as pltpu

IN = 8            # LunarLander observation dim
HIDDEN = 64
HIDDEN_PAD = 128  # lane-dense hidden width
OUT = 4           # number of actions
OUT_PAD = 128     # lane-dense output width (wrapper slices [:, :4])


def _round_up(x, m):
    return (x + m - 1) // m * m


def qnet_kernel(x_ref, w1_ref, b1_ref, w2_ref, b2_ref, w3_ref, b3_ref, o_ref):
    """One batch tile: fc1 -> relu -> fc2 -> relu -> fc3, bf16 matmuls, f32 accum."""
    x = x_ref[...].astype(jnp.bfloat16)                                   # [TM, 8]
    h1 = jnp.dot(x, w1_ref[...], preferred_element_type=jnp.float32) + b1_ref[...]
    h1 = jnp.maximum(h1, 0.0)                                             # [TM, 128] f32
    h2 = jnp.dot(h1.astype(jnp.bfloat16), w2_ref[...],
                 preferred_element_type=jnp.float32) + b2_ref[...]
    h2 = jnp.maximum(h2, 0.0)                                             # [TM, 128] f32
    out = jnp.dot(h2.astype(jnp.bfloat16), w3_ref[...],
                  preferred_element_type=jnp.float32) + b3_ref[...]       # [TM, 128] f32
    o_ref[...] = out.astype(o_ref.dtype)


def pack_params(params):
    """Zero-pad hidden 64->128 and output 4->128; cast matmul weights to bf16.

    Exactly equivalent to the unpadded network (padded units have zero weights in
    and out, biases zero).  In a training loop, call this once per parameter update.
    """
    f32, bf16 = jnp.float32, jnp.bfloat16
    hp, op = HIDDEN_PAD - HIDDEN, OUT_PAD - OUT
    w1 = jnp.pad(params["w1"].astype(f32), ((0, 0), (0, hp)))
    b1 = jnp.pad(params["b1"].astype(f32).reshape(1, HIDDEN), ((0, 0), (0, hp)))
    w2 = jnp.pad(params["w2"].astype(f32), ((0, hp), (0, hp)))
    b2 = jnp.pad(params["b2"].astype(f32).reshape(1, HIDDEN), ((0, 0), (0, hp)))
    w3 = jnp.pad(params["w3"].astype(f32), ((0, hp), (0, op)))
    b3 = jnp.pad(params["b3"].astype(f32).reshape(1, OUT), ((0, 0), (0, op)))
    return dict(w1=w1.astype(bf16), b1=b1, w2=w2.astype(bf16), b2=b2,
                w3=w3.astype(bf16), b3=b3)


@functools.partial(jax.jit, static_argnames=("tm",))
def qnetwork_forward(state, params, *, tm=2048):
    """Pallas forward: state [B, 8] (f32 or bf16) -> Q-values [B, 4] f32."""
    B = state.shape[0]
    p = pack_params(params)

    # Batch tile: at most `tm`, rounded to a multiple of 16 (sublane granularity,
    # valid for both f32 and bf16 states).  Pad B up to a whole number of tiles.
    tm_eff = min(tm, _round_up(B, 16))
    b_pad = _round_up(B, tm_eff)
    if b_pad != B:
        state = jnp.pad(state, ((0, b_pad - B), (0, 0)))

    grid = (b_pad // tm_eff,)
    resident = lambda i: (0, 0)   # same block every grid step -> stays in VMEM

    weight_bytes = (IN * HIDDEN_PAD + 2 * HIDDEN_PAD * HIDDEN_PAD) * 2 + 3 * HIDDEN_PAD * 4
    cost = pl.CostEstimate(
        flops=2 * b_pad * (IN * HIDDEN + HIDDEN * HIDDEN + HIDDEN * OUT),
        transcendentals=0,
        bytes_accessed=b_pad * (IN * state.dtype.itemsize + OUT_PAD * 4) + weight_bytes,
    )

    # Note: output is stored lane-dense ([*, 128]) per review guidance; if the padded
    # HBM write bytes ever dominate, switch the out block to (TM, 4) (contiguous HBM,
    # ~32x fewer write bytes) and re-measure.
    out = pl.pallas_call(
        qnet_kernel,
        out_shape=jax.ShapeDtypeStruct((b_pad, OUT_PAD), jnp.float32),
        grid_spec=pltpu.PrefetchScalarGridSpec(
            num_scalar_prefetch=0,
            grid=grid,
            in_specs=[
                pl.BlockSpec((tm_eff, IN), lambda i: (i, 0)),       # x tile (pipelined)
                pl.BlockSpec((IN, HIDDEN_PAD), resident),           # w1  [8, 128] bf16
                pl.BlockSpec((1, HIDDEN_PAD), resident),            # b1  [1, 128] f32
                pl.BlockSpec((HIDDEN_PAD, HIDDEN_PAD), resident),   # w2  [128, 128] bf16
                pl.BlockSpec((1, HIDDEN_PAD), resident),            # b2  [1, 128] f32
                pl.BlockSpec((HIDDEN_PAD, OUT_PAD), resident),      # w3  [128, 128] bf16
                pl.BlockSpec((1, OUT_PAD), resident),               # b3  [1, 128] f32
            ],
            out_specs=pl.BlockSpec((tm_eff, OUT_PAD), lambda i: (i, 0)),
        ),
        compiler_params=pltpu.CompilerParams(
            dimension_semantics=("parallel",),   # megacore sharding on v7x
        ),
        cost_estimate=cost,
    )(state, p["w1"], p["b1"], p["w2"], p["b2"], p["w3"], p["b3"])

    return out[:B, :OUT]


def qnetwork_forward_xla(state, params):
    """Pure-XLA f32 forward (PyTorch numerics).  Prefer this for tiny batches."""
    h1 = jnp.maximum(state @ params["w1"] + params["b1"], 0.0)
    h2 = jnp.maximum(h1 @ params["w2"] + params["b2"], 0.0)
    return h2 @ params["w3"] + params["b3"]


def _reference_mixed(state, params):
    """Reference with the same bf16-input / f32-accumulation precision as the kernel."""
    bf16, f32 = jnp.bfloat16, jnp.float32
    h1 = jnp.maximum(jnp.dot(state.astype(bf16), params["w1"].astype(bf16),
                             preferred_element_type=f32) + params["b1"], 0.0)
    h2 = jnp.maximum(jnp.dot(h1.astype(bf16), params["w2"].astype(bf16),
                             preferred_element_type=f32) + params["b2"], 0.0)
    return jnp.dot(h2.astype(bf16), params["w3"].astype(bf16),
                   preferred_element_type=f32) + params["b3"]


def init_params(key):
    """Mirror torch.nn.Linear default init: U(-1/sqrt(fan_in), 1/sqrt(fan_in))."""
    ks = jax.random.split(key, 6)

    def linear(kw, kb, fan_in, fan_out):
        bound = 1.0 / jnp.sqrt(jnp.float32(fan_in))
        w = jax.random.uniform(kw, (fan_in, fan_out), jnp.float32, -bound, bound)
        b = jax.random.uniform(kb, (1, fan_out), jnp.float32, -bound, bound)
        return w, b

    w1, b1 = linear(ks[0], ks[1], IN, HIDDEN)
    w2, b2 = linear(ks[2], ks[3], HIDDEN, HIDDEN)
    w3, b3 = linear(ks[4], ks[5], HIDDEN, OUT)
    return {"w1": w1, "b1": b1, "w2": w2, "b2": b2, "w3": w3, "b3": b3}


if __name__ == "__main__":
    key = jax.random.PRNGKey(0)
    k_params, k_state, k_state2 = jax.random.split(key, 3)
    params = init_params(k_params)

    # Small primary test (batch=2, obs dim=8 -> 4 Q-values): single-tile grid.
    B = 2
    state = jax.random.normal(k_state, (B, IN), jnp.float32)
    out = jax.block_until_ready(qnetwork_forward(state, params))
    assert out.shape == (B, OUT), out.shape
    assert jnp.allclose(out, _reference_mixed(state, params), atol=2e-3, rtol=2e-3), \
        "mismatch vs bf16-matched reference"
    assert jnp.allclose(out, qnetwork_forward_xla(state, params), atol=5e-2, rtol=5e-2), \
        "mismatch vs pure-f32 reference"

    # Multi-tile test: exercises the batch grid, resident weights, and tail padding
    # (B=640 with tm=256 -> B_pad=768, 3 grid steps).
    B2 = 640
    state2 = jax.random.normal(k_state2, (B2, IN), jnp.float32)
    out2 = jax.block_until_ready(qnetwork_forward(state2, params, tm=256))
    assert out2.shape == (B2, OUT), out2.shape
    assert jnp.allclose(out2, _reference_mixed(state2, params), atol=2e-3, rtol=2e-3), \
        "multi-tile mismatch vs bf16-matched reference"

    print("KERNEL_OK")
</pallas_src>

<mosaic_0001>
module attributes {stable_mosaic.version = 11 : i64} {
  func.func @qnet_kernel(%arg0: i32, %arg1: memref<16x8xf32, #tpu.memory_space<vmem>>, %arg2: memref<8x128xbf16, #tpu.memory_space<vmem>>, %arg3: memref<1x128xf32, #tpu.memory_space<vmem>>, %arg4: memref<128x128xbf16, #tpu.memory_space<vmem>>, %arg5: memref<1x128xf32, #tpu.memory_space<vmem>>, %arg6: memref<128x128xbf16, #tpu.memory_space<vmem>>, %arg7: memref<1x128xf32, #tpu.memory_space<vmem>>, %arg8: memref<16x128xf32, #tpu.memory_space<vmem>>) attributes {dimension_semantics = [#tpu.dimension_semantics<parallel>], iteration_bounds = array<i64: 1>, scalar_prefetch = 0 : i64, scratch_operands = 0 : i64, tpu.core_type = #tpu.core_type<tc>, window_params = [{transform_indices = @transform_0, window_bounds = array<i64: 16, 8>}, {pipeline_mode = #tpu.pipeline_mode<synchronous>, transform_indices = @transform_1, window_bounds = array<i64: 8, 128>}, {pipeline_mode = #tpu.pipeline_mode<synchronous>, transform_indices = @transform_2, window_bounds = array<i64: 1, 128>}, {pipeline_mode = #tpu.pipeline_mode<synchronous>, transform_indices = @transform_3, window_bounds = array<i64: 128, 128>}, {pipeline_mode = #tpu.pipeline_mode<synchronous>, transform_indices = @transform_4, window_bounds = array<i64: 1, 128>}, {pipeline_mode = #tpu.pipeline_mode<synchronous>, transform_indices = @transform_5, window_bounds = array<i64: 128, 128>}, {pipeline_mode = #tpu.pipeline_mode<synchronous>, transform_indices = @transform_6, window_bounds = array<i64: 1, 128>}, {transform_indices = @transform_7, window_bounds = array<i64: 16, 128>}]} {
    %c0 = arith.constant 0 : index
    %c0_0 = arith.constant 0 : index
    %0 = vector.load %arg1[%c0, %c0_0] : memref<16x8xf32, #tpu.memory_space<vmem>>, vector<16x8xf32>
    %1 = arith.truncf %0 : vector<16x8xf32> to vector<16x8xbf16>
    %c0_1 = arith.constant 0 : index
    %c0_2 = arith.constant 0 : index
    %2 = vector.load %arg2[%c0_1, %c0_2] : memref<8x128xbf16, #tpu.memory_space<vmem>>, vector<8x128xbf16>
    %cst = arith.constant dense<0.000000e+00> : vector<16x128xf32>
    %3 = tpu.matmul %1, %2, %cst {dimension_numbers = #tpu.dot_dimension_numbers<[1], [0], [0], [1], [0, 0, 1, 1], [], []>} : vector<16x8xbf16>, vector<8x128xbf16>, vector<16x128xf32> -> vector<16x128xf32>
    %c0_3 = arith.constant 0 : index
    %c0_4 = arith.constant 0 : index
    %4 = vector.load %arg3[%c0_3, %c0_4] : memref<1x128xf32, #tpu.memory_space<vmem>>, vector<1x128xf32>
    %5 = vector.broadcast %4 : vector<1x128xf32> to vector<16x128xf32>
    %6 = arith.addf %3, %5 : vector<16x128xf32>
    %cst_5 = arith.constant 0.000000e+00 : f32
    %7 = vector.broadcast %cst_5 : f32 to vector<16x128xf32>
    %8 = arith.maximumf %6, %7 : vector<16x128xf32>
    %9 = arith.truncf %8 : vector<16x128xf32> to vector<16x128xbf16>
    %c0_6 = arith.constant 0 : index
    %c0_7 = arith.constant 0 : index
    %10 = vector.load %arg4[%c0_6, %c0_7] : memref<128x128xbf16, #tpu.memory_space<vmem>>, vector<128x128xbf16>
    %cst_8 = arith.constant dense<0.000000e+00> : vector<16x128xf32>
    %11 = tpu.matmul %9, %10, %cst_8 {dimension_numbers = #tpu.dot_dimension_numbers<[1], [0], [0], [1], [0, 0, 1, 1], [], []>} : vector<16x128xbf16>, vector<128x128xbf16>, vector<16x128xf32> -> vector<16x128xf32>
    %c0_9 = arith.constant 0 : index
    %c0_10 = arith.constant 0 : index
    %12 = vector.load %arg5[%c0_9, %c0_10] : memref<1x128xf32, #tpu.memory_space<vmem>>, vector<1x128xf32>
    %13 = vector.broadcast %12 : vector<1x128xf32> to vector<16x128xf32>
    %14 = arith.addf %11, %13 : vector<16x128xf32>
    %cst_11 = arith.constant 0.000000e+00 : f32
    %15 = vector.broadcast %cst_11 : f32 to vector<16x128xf32>
    %16 = arith.maximumf %14, %15 : vector<16x128xf32>
    %17 = arith.truncf %16 : vector<16x128xf32> to vector<16x128xbf16>
    %c0_12 = arith.constant 0 : index
    %c0_13 = arith.constant 0 : index
    %18 = vector.load %arg6[%c0_12, %c0_13] : memref<128x128xbf16, #tpu.memory_space<vmem>>, vector<128x128xbf16>
    %cst_14 = arith.constant dense<0.000000e+00> : vector<16x128xf32>
    %19 = tpu.matmul %17, %18, %cst_14 {dimension_numbers = #tpu.dot_dimension_numbers<[1], [0], [0], [1], [0, 0, 1, 1], [], []>} : vector<16x128xbf16>, vector<128x128xbf16>, vector<16x128xf32> -> vector<16x128xf32>
    %c0_15 = arith.constant 0 : index
    %c0_16 = arith.constant 0 : index
    %20 = vector.load %arg7[%c0_15, %c0_16] : memref<1x128xf32, #tpu.memory_space<vmem>>, vector<1x128xf32>
    %21 = vector.broadcast %20 : vector<1x128xf32> to vector<16x128xf32>
    %22 = arith.addf %19, %21 : vector<16x128xf32>
    %c0_17 = arith.constant 0 : index
    %c0_18 = arith.constant 0 : index
    %23 = vector.load %arg8[%c0_17, %c0_18] : memref<16x128xf32, #tpu.memory_space<vmem>>, vector<16x128xf32>
    tpu.vector_store %arg8[%c0_17, %c0_18], %22 {strides = array<i32>} : memref<16x128xf32, #tpu.memory_space<vmem>>, vector<16x128xf32>,
    return
  }
  func.func @transform_0(%arg0: i32) -> (i32, i32) {
    %c0_i32 = arith.constant 0 : i32
    %c0_i32_0 = arith.constant 0 : i32
    return %arg0, %c0_i32 : i32, i32
  }
  func.func @transform_1(%arg0: i32) -> (i32, i32) {
    %c0_i32 = arith.constant 0 : i32
    %c0_i32_0 = arith.constant 0 : i32
    %c0_i32_1 = arith.constant 0 : i32
    return %c0_i32, %c0_i32_0 : i32, i32
  }
  func.func @transform_2(%arg0: i32) -> (i32, i32) {
    %c0_i32 = arith.constant 0 : i32
    %c0_i32_0 = arith.constant 0 : i32
    %c0_i32_1 = arith.constant 0 : i32
    return %c0_i32, %c0_i32_0 : i32, i32
  }
  func.func @transform_3(%arg0: i32) -> (i32, i32) {
    %c0_i32 = arith.constant 0 : i32
    %c0_i32_0 = arith.constant 0 : i32
    %c0_i32_1 = arith.constant 0 : i32
    return %c0_i32, %c0_i32_0 : i32, i32
  }
  func.func @transform_4(%arg0: i32) -> (i32, i32) {
    %c0_i32 = arith.constant 0 : i32
    %c0_i32_0 = arith.constant 0 : i32
    %c0_i32_1 = arith.constant 0 : i32
    return %c0_i32, %c0_i32_0 : i32, i32
  }
  func.func @transform_5(%arg0: i32) -> (i32, i32) {
    %c0_i32 = arith.constant 0 : i32
    %c0_i32_0 = arith.constant 0 : i32
    %c0_i32_1 = arith.constant 0 : i32
    return %c0_i32, %c0_i32_0 : i32, i32
  }
  func.func @transform_6(%arg0: i32) -> (i32, i32) {
    %c0_i32 = arith.constant 0 : i32
    %c0_i32_0 = arith.constant 0 : i32
    %c0_i32_1 = arith.constant 0 : i32
    return %c0_i32, %c0_i32_0 : i32, i32
  }
  func.func @transform_7(%arg0: i32) -> (i32, i32) {
    %c0_i32 = arith.constant 0 : i32
    %c0_i32_0 = arith.constant 0 : i32
    return %arg0, %c0_i32 : i32, i32
  }
}

</mosaic_0001>

<bundles_post_ra>
// kernel: qnetwork_forward.1
= control target key start
LH: loop header
LB: loop body
LE: loop exit
PB: predicated region body
PF: predicated region fallthrough
CT: control target
= control target key end

     0   :  { %vm39_vm0 = vcmask 1043456   ;;  %vm35_vm1 = vcmask 64512   ;;  %s429_s1 = inlined_call_operand.vmem [shape: bf16[8,128], index: 1, kind: input, shape index: {}]   ;;  %s430_s0 = inlined_call_operand.vmem [shape: f32[16,8], index: 0, kind: input, shape index: {}]   ;;  %s431_s3 = inlined_call_operand.vmem [shape: bf16[128,128], index: 3, kind: input, shape index: {}]   ;;  %s432_s2 = inlined_call_operand.vmem [shape: f32[1,128], index: 2, kind: input, shape index: {}]   ;;  %s433_s4 = inlined_call_operand.vmem [shape: f32[1,128], index: 4, kind: input, shape index: {}]   ;;  %s434_s5 = inlined_call_operand.vmem [shape: bf16[128,128], index: 5, kind: input, shape index: {}]   ;;  %s435_s6 = inlined_call_operand.vmem [shape: f32[1,128], index: 6, kind: input, shape index: {}]   ;;  %s436_s7 = inlined_call_operand.vmem [shape: f32[16,128], index: 7, kind: output, shape index: {}]  }
   0x1   :  { %v30_v0 = vld [vmem:[%s429_s1] sm:$0xf]  ;;  %v28_v2 = vld [vmem:[%s430_s0 + $0x8] sm:$0xff]  ;;  %v305_v5 = vld [vmem:[%s431_s3 + $0x38] sm:$0xff] }
   0x2   :  { %v27_v1 = vld [vmem:[%s430_s0] sm:$0xff]  ;;  %v41_v3 = vsel %vm39_vm0, %v30_v0, 0  ;;  %128 = vmatpush.bf16.msra.mxu1 %v305_v5  ;;  %v304_v6 = vld [vmem:[%s431_s3 + $0x30] sm:$0xff]  ;;  %v303_v7 = vld [vmem:[%s431_s3 + $0x28] sm:$0xff] }
   0x3   :  { %v29_v4 = vpack.c.bf16 %v28_v2, %v27_v1  ;;  %50 = vmatpush.bf16.msra.mxu0 %v41_v3  ;;  %v302_v8 = vld [vmem:[%s431_s3 + $0x20] sm:$0xff]  ;;  %v301_v9 = vld [vmem:[%s431_s3 + $0x18] sm:$0xff]  ;;  %v300_v10 = vld [vmem:[%s431_s3 + $0x10] sm:$0xff] }
   0x4   :  { %v299_v11 = vld [vmem:[%s431_s3 + $0x8] sm:$0xff]  ;;  %v298_v12 = vld [vmem:[%s431_s3] sm:$0xff]  ;;  %v313_v13 = vld [vmem:[%s434_s5 + $0x38] sm:$0xff] }
   0x5   :  { %213 = vmatpush.bf16.msra.mxu2 %v313_v13  ;;  %v312_v14 = vld [vmem:[%s434_s5 + $0x30] sm:$0xff]  ;;  %v311_v15 = vld [vmem:[%s434_s5 + $0x28] sm:$0xff]  ;;  %v310_v16 = vld [vmem:[%s434_s5 + $0x20] sm:$0xff] }
   0x6   :  { %233 = vmatmul.msk.bf16.vlgmr.msra.gmra.mxu0 %vm35_vm1, %v29_v4  ;;  %129 = vmatpush.bf16.msra.mxu1 %v304_v6  ;;  %v314_v18 = vld [vmem:[%s432_s2] ss:$0 sm:$0xff]  ;;  %v309_v25 = vld [vmem:[%s434_s5 + $0x18] sm:$0xff]  ;;  %v308_v26 = vld [vmem:[%s434_s5 + $0x10] sm:$0xff] }
   0x7   :  { %v307_v27 = vld [vmem:[%s434_s5 + $0x8] sm:$0xff]  ;;  %v306_v28 = vld [vmem:[%s434_s5] sm:$0xff] }
   0x8   :  { %v315_v30 = vld [vmem:[%s433_s4] ss:$0 sm:$0xff] }
   0x9   :  { %214 = vmatpush.bf16.msra.mxu2 %v312_v14  ;;  %v316_v37 = vld [vmem:[%s435_s6] ss:$0 sm:$0xff] }
   0xa   :  { %130 = vmatpush.bf16.msra.mxu1 %v303_v7 }
   0xd   :  { %215 = vmatpush.bf16.msra.mxu2 %v311_v15 }
   0xe   :  { %131 = vmatpush.bf16.msra.mxu1 %v302_v8 }
  0x11   :  { %216 = vmatpush.bf16.msra.mxu2 %v310_v16 }
  0x12   :  { %132 = vmatpush.bf16.msra.mxu1 %v301_v9 }
  0x15   :  { %217 = vmatpush.bf16.msra.mxu2 %v309_v25 }
  0x16   :  { %133 = vmatpush.bf16.msra.mxu1 %v300_v10 }
  0x19   :  { %218 = vmatpush.bf16.msra.mxu2 %v308_v26 }
  0x1a   :  { %134 = vmatpush.bf16.msra.mxu1 %v299_v11 }
  0x1d   :  { %219 = vmatpush.bf16.msra.mxu2 %v307_v27 }
  0x1e   :  { %135 = vmatpush.bf16.msra.mxu1 %v298_v12 }
  0x21   :  { %220 = vmatpush.bf16.msra.mxu2 %v306_v28 }
  0x83   :  { %v52_v17 = vpop.f32.mrf.mxu0 }
  0x84   :  { %v53_v19 = vadd.f32 %v314_v18, %v52_v17 }
  0x86   :  { %v57_v22 = vmax.f32 %v53_v19, 0.0 }
  0x8b   :  { %v54_v20 = vpop.f32.mrf.mxu0 }
  0x8c   :  { %v55_v21 = vadd.f32 %v314_v18, %v54_v20 }
  0x8e   :  { %v58_v23 = vmax.f32 %v55_v21, 0.0 }
  0x90   :  { %v59_v24 = vpack.c.bf16 %v58_v23, %v57_v22 }
  0x92   :  { %136 = vmatmul.bf16.vlgmr.msra.gmra.mxu1 %v59_v24 }
 0x10f   :  { %v137_v29 = vpop.f32.mrf.mxu1 }
 0x110   :  { %v138_v31 = vadd.f32 %v315_v30, %v137_v29 }
 0x112   :  { %v142_v34 = vmax.f32 %v138_v31, 0.0 }
 0x117   :  { %v139_v32 = vpop.f32.mrf.mxu1 }
 0x118   :  { %v140_v33 = vadd.f32 %v315_v30, %v139_v32 }
 0x11a   :  { %v143_v35 = vmax.f32 %v140_v33, 0.0 }
 0x11c   :  { %v144_v36 = vpack.c.bf16 %v143_v35, %v142_v34 }
 0x11e   :  { %221 = vmatmul.bf16.vlgmr.msra.gmra.mxu2 %v144_v36 }
 0x1a1   :  { %v222_v38 = vpop.f32.mrf.mxu2 }
 0x1a2   :  { %v223_v39 = vadd.f32 %v316_v37, %v222_v38 }
 0x1a4   :  { %227 = vst [vmem:[%s436_s7] sm:$0xff] %v223_v39 }
 0x1a9   :  { %v224_v40 = vpop.f32.mrf.mxu2 }
 0x1aa   :  { %v225_v41 = vadd.f32 %v316_v37, %v224_v40 }
 0x1ac   :  { %228 = vst [vmem:[%s436_s7 + $0x8] sm:$0xff] %v225_v41 }

</bundles_post_ra>
